<compile_context>
chip_gen: v7x
topology: tpu7x:2x2x1
jax: 0.10.0
libtpu: 0.0.40
codegen_flags: <defaults>
</compile_context>

<pallas_src>
import functools

import jax
import jax.numpy as jnp
from jax.experimental import pallas as pl
from jax.experimental.pallas import tpu as pltpu


_VMEM_LIMIT_BYTES = 48 * 1024 * 1024   # leaves headroom on v5e/v6e/v7x


def _pick_tile(n):
    for t in (256, 128, 64, 32, 16, 8):
        if n % t == 0:
            return t
    return n


# ------------------------------------------------------------------ pass 1
def groupnorm_stats_kernel(x_ref, gmat_ref, mean_ref, rstd_ref,
                           sum_sc, ssq_sc, *, eps, inv_count):
    """Accumulate per-channel sum / sum-of-squares over N tiles; finalize per-group
    mean / rstd broadcast back to channels via the group-membership matrix."""
    j = pl.program_id(1)

    @pl.when(j == 0)
    def _():
        sum_sc[...] = jnp.zeros_like(sum_sc[...])
        ssq_sc[...] = jnp.zeros_like(ssq_sc[...])

    x = x_ref[...]                                          # (TN, Cp) f32
    sum_sc[...] += jnp.sum(x, axis=0, keepdims=True)
    ssq_sc[...] += jnp.sum(x * x, axis=0, keepdims=True)

    @pl.when(j == pl.num_programs(1) - 1)
    def _():
        gmat = gmat_ref[...]                                # (Cp, Cp) same-group mask
        gsum = jnp.dot(sum_sc[...], gmat, preferred_element_type=jnp.float32)
        gssq = jnp.dot(ssq_sc[...], gmat, preferred_element_type=jnp.float32)
        mean = gsum * inv_count
        var = gssq * inv_count - mean * mean
        mean_ref[...] = mean
        rstd_ref[...] = jax.lax.rsqrt(var + eps)


# ------------------------------------------------------------------ pass 2
def norm_qkv_kernel(x_ref, mean_ref, rstd_ref, gamma_ref, beta_ref,
                    wq_ref, bq_ref, wk_ref, bk_ref, wv_ref, bv_ref,
                    q_ref, k_ref, v_ref):
    """Normalize one spatial tile and compute the q/k/v 1x1 projections (bf16 MXU
    inputs, f32 accumulation). Softmax scale is pre-folded into wq/bq."""
    hn = ((x_ref[...] - mean_ref[...]) * rstd_ref[...] * gamma_ref[...]
          + beta_ref[...]).astype(jnp.bfloat16)
    q_ref[...] = (jnp.dot(hn, wq_ref[...], preferred_element_type=jnp.float32)
                  + bq_ref[...]).astype(jnp.bfloat16)
    k_ref[...] = (jnp.dot(hn, wk_ref[...], preferred_element_type=jnp.float32)
                  + bk_ref[...]).astype(jnp.bfloat16)
    v_ref[...] = (jnp.dot(hn, wv_ref[...], preferred_element_type=jnp.float32)
                  + bv_ref[...]).astype(jnp.bfloat16)


# ------------------------------------------------------------------ pass 3
def flash_attn_kernel(x_ref, q_ref, k_ref, v_ref, wp_ref, bp_ref, o_ref,
                      m_sc, l_sc, acc_sc):
    """Online-softmax attention over kv tiles; output projection + residual fused
    into the last kv step."""
    kj = pl.program_id(2)

    @pl.when(kj == 0)
    def _():
        m_sc[...] = jnp.full_like(m_sc[...], -jnp.inf)
        l_sc[...] = jnp.zeros_like(l_sc[...])
        acc_sc[...] = jnp.zeros_like(acc_sc[...])

    # s[q, k] = <q_tile[q, :], k_tile[k, :]>  (contraction over channels, bf16 MXU)
    s = jax.lax.dot_general(
        q_ref[...], k_ref[...],
        dimension_numbers=(((1,), (1,)), ((), ())),
        preferred_element_type=jnp.float32)                 # (TQ, TK) f32

    m_new = jnp.maximum(m_sc[...], jnp.max(s, axis=-1, keepdims=True))
    alpha = jnp.exp(m_sc[...] - m_new)
    p = jnp.exp(s - m_new)
    l_sc[...] = alpha * l_sc[...] + jnp.sum(p, axis=-1, keepdims=True)
    acc_sc[...] = alpha * acc_sc[...] + jnp.dot(
        p.astype(jnp.bfloat16), v_ref[...], preferred_element_type=jnp.float32)
    m_sc[...] = m_new

    @pl.when(kj == pl.num_programs(2) - 1)
    def _():
        ctx = acc_sc[...] * pl.reciprocal(l_sc[...], approx=True)
        proj = jnp.dot(ctx.astype(jnp.bfloat16), wp_ref[...],
                       preferred_element_type=jnp.float32) + bp_ref[...]
        o_ref[...] = x_ref[...] + proj


# ------------------------------------------------------------------ wrapper
def attn_block(x_nchw, params, *, num_groups=32, eps=1e-6):
    b, c, h, w = x_nchw.shape
    n = h * w
    assert c % num_groups == 0, "GroupNorm requires channels divisible by num_groups"
    assert n % 8 == 0, "H*W must be a multiple of 8 for TPU sublane tiling"
    gs = c // num_groups

    c_pad = ((c + 127) // 128) * 128            # lane-dense channel dim
    pad = c_pad - c

    tile = _pick_tile(n)
    nt = n // tile

    # glue: NCHW -> (B, N, Cp), zero-padded channels
    # TODO(synk): fold the NCHW<->(B,N,C) transposes into the kernel DMAs (in-kernel
    # XLU transpose of (C, tile) blocks) instead of separate XLA transpose ops.
    x = jnp.transpose(x_nchw.reshape(b, c, n), (0, 2, 1)).astype(jnp.float32)
    if pad:
        x = jnp.pad(x, ((0, 0), (0, 0), (0, pad)))

    # Group-membership matrix; padded channels get dummy groups (their gamma/beta are
    # zero and their data is zero, so they stay exactly zero end-to-end).
    gid = jnp.arange(c) // gs
    if pad:
        gid = jnp.concatenate([gid, num_groups + jnp.arange(pad)])
    gmat = (gid[:, None] == gid[None, :]).astype(jnp.float32)            # (Cp, Cp)

    def pad_row(v):
        v = v.reshape(1, c).astype(jnp.float32)
        return jnp.pad(v, ((0, 0), (0, pad))) if pad else v

    gamma, beta = pad_row(params["gamma"]), pad_row(params["beta"])

    scale = float(c) ** (-0.5)                 # folded into wq / bq

    def conv_w(key, s=1.0):                    # (Cout, Cin, 1, 1) -> (Cin, Cout), bf16
        wgt = params[key][:, :, 0, 0].T.astype(jnp.float32) * s
        if pad:
            wgt = jnp.pad(wgt, ((0, pad), (0, pad)))
        return wgt.astype(jnp.bfloat16)

    def conv_b(key, s=1.0):
        return pad_row(params[key].astype(jnp.float32) * s)

    wq, bq = conv_w("wq", scale), conv_b("bq", scale)
    wk, bk = conv_w("wk"), conv_b("bk")
    wv, bv = conv_w("wv"), conv_b("bv")
    wp, bp = conv_w("wp"), conv_b("bp")

    # ---- pass 1: GroupNorm statistics (full-N reduction per batch element)
    mean, rstd = pl.pallas_call(
        functools.partial(groupnorm_stats_kernel,
                          eps=float(eps), inv_count=1.0 / float(n * gs)),
        out_shape=(jax.ShapeDtypeStruct((b, 1, c_pad), jnp.float32),
                   jax.ShapeDtypeStruct((b, 1, c_pad), jnp.float32)),
        grid_spec=pltpu.PrefetchScalarGridSpec(
            num_scalar_prefetch=0,
            grid=(b, nt),
            in_specs=[
                pl.BlockSpec((None, tile, c_pad), lambda i, j: (i, j, 0)),
                pl.BlockSpec((c_pad, c_pad), lambda i, j: (0, 0)),
            ],
            out_specs=[
                pl.BlockSpec((None, 1, c_pad), lambda i, j: (i, 0, 0)),
                pl.BlockSpec((None, 1, c_pad), lambda i, j: (i, 0, 0)),
            ],
            scratch_shapes=[pltpu.VMEM((1, c_pad), jnp.float32),
                            pltpu.VMEM((1, c_pad), jnp.float32)],
        ),
        compiler_params=pltpu.CompilerParams(
            dimension_semantics=("parallel", "arbitrary"),
            vmem_limit_bytes=_VMEM_LIMIT_BYTES),
    )(x, gmat)

    # ---- pass 2: normalize once + q/k/v projections (bf16 outputs in HBM)
    def _tile_map(i, j):
        return (i, j, 0)

    def _per_batch2(i, j):
        return (i, 0, 0)

    def _const2(i, j):
        return (0, 0)

    qkv_out_spec = pl.BlockSpec((None, tile, c_pad), _tile_map)
    q_arr, k_arr, v_arr = pl.pallas_call(
        norm_qkv_kernel,
        out_shape=(jax.ShapeDtypeStruct((b, n, c_pad), jnp.bfloat16),
                   jax.ShapeDtypeStruct((b, n, c_pad), jnp.bfloat16),
                   jax.ShapeDtypeStruct((b, n, c_pad), jnp.bfloat16)),
        grid_spec=pltpu.PrefetchScalarGridSpec(
            num_scalar_prefetch=0,
            grid=(b, nt),
            in_specs=[
                pl.BlockSpec((None, tile, c_pad), _tile_map),   # x tile
                pl.BlockSpec((None, 1, c_pad), _per_batch2),    # mean
                pl.BlockSpec((None, 1, c_pad), _per_batch2),    # rstd
                pl.BlockSpec((1, c_pad), _const2),              # gamma
                pl.BlockSpec((1, c_pad), _const2),              # beta
                pl.BlockSpec((c_pad, c_pad), _const2),          # wq (pre-scaled)
                pl.BlockSpec((1, c_pad), _const2),              # bq (pre-scaled)
                pl.BlockSpec((c_pad, c_pad), _const2),          # wk
                pl.BlockSpec((1, c_pad), _const2),              # bk
                pl.BlockSpec((c_pad, c_pad), _const2),          # wv
                pl.BlockSpec((1, c_pad), _const2),              # bv
            ],
            out_specs=[qkv_out_spec, qkv_out_spec, qkv_out_spec],
        ),
        compiler_params=pltpu.CompilerParams(
            dimension_semantics=("parallel", "parallel"),
            vmem_limit_bytes=_VMEM_LIMIT_BYTES),
    )(x, mean, rstd, gamma, beta, wq, bq, wk, bk, wv, bv)

    # ---- pass 3: flash attention + output projection + residual
    def _q_tile(i, qi, kj):
        return (i, qi, 0)

    def _kv_tile(i, qi, kj):
        return (i, kj, 0)

    def _const3(i, qi, kj):
        return (0, 0)

    out = pl.pallas_call(
        flash_attn_kernel,
        out_shape=jax.ShapeDtypeStruct((b, n, c_pad), jnp.float32),
        grid_spec=pltpu.PrefetchScalarGridSpec(
            num_scalar_prefetch=0,
            grid=(b, nt, nt),
            in_specs=[
                pl.BlockSpec((None, tile, c_pad), _q_tile),     # x (residual, f32)
                pl.BlockSpec((None, tile, c_pad), _q_tile),     # q tile (bf16)
                pl.BlockSpec((None, tile, c_pad), _kv_tile),    # k tile (bf16)
                pl.BlockSpec((None, tile, c_pad), _kv_tile),    # v tile (bf16)
                pl.BlockSpec((c_pad, c_pad), _const3),          # wp
                pl.BlockSpec((1, c_pad), _const3),              # bp
            ],
            out_specs=pl.BlockSpec((None, tile, c_pad), _q_tile),
            scratch_shapes=[
                pltpu.VMEM((tile, 1), jnp.float32),             # running max
                pltpu.VMEM((tile, 1), jnp.float32),             # running sum
                pltpu.VMEM((tile, c_pad), jnp.float32),         # output accumulator
            ],
        ),
        compiler_params=pltpu.CompilerParams(
            dimension_semantics=("parallel", "parallel", "arbitrary"),
            vmem_limit_bytes=_VMEM_LIMIT_BYTES),
    )(x, q_arr, k_arr, v_arr, wp, bp)

    # glue: (B, N, Cp) -> NCHW (drop channel padding)
    out = out[:, :, :c]
    return jnp.transpose(out, (0, 2, 1)).reshape(b, c, h, w).astype(x_nchw.dtype)


# ------------------------------------------------------------------ reference
def attn_block_reference(x, params, *, num_groups=32, eps=1e-6):
    """Pure-JAX f32 reference mirroring the PyTorch forward (NCHW)."""
    b, c, h, w = x.shape
    gs = c // num_groups
    xg = x.reshape(b, num_groups, gs, h, w)
    mean = xg.mean(axis=(2, 3, 4), keepdims=True)
    var = ((xg - mean) ** 2).mean(axis=(2, 3, 4), keepdims=True)
    hn = ((xg - mean) / jnp.sqrt(var + eps)).reshape(b, c, h, w)
    hn = hn * params["gamma"][None, :, None, None] + params["beta"][None, :, None, None]

    def conv1x1(t, wgt, bias):
        return jnp.einsum("bchw,oc->bohw", t, wgt[:, :, 0, 0]) + bias[None, :, None, None]

    q = conv1x1(hn, params["wq"], params["bq"])
    k = conv1x1(hn, params["wk"], params["bk"])
    v = conv1x1(hn, params["wv"], params["bv"])
    n = h * w
    qf = q.reshape(b, c, n).transpose(0, 2, 1)
    kf = k.reshape(b, c, n)
    w_ = jnp.einsum("bqc,bck->bqk", qf, kf) * (int(c) ** (-0.5))
    w_ = jax.nn.softmax(w_, axis=2)
    vf = v.reshape(b, c, n)
    out = jnp.einsum("bck,bqk->bcq", vf, w_).reshape(b, c, h, w)
    proj = conv1x1(out, params["wp"], params["bp"])
    return x + proj


if __name__ == "__main__":
    # Small but tiling-exercising config: C=64 is padded to 128 lanes, N=512 gives
    # 2 query tiles x 2 kv tiles per batch element (online softmax actually iterates).
    B, C, H, W = 2, 64, 16, 32
    key = jax.random.PRNGKey(0)
    keys = jax.random.split(key, 11)

    x = jax.random.normal(keys[0], (B, C, H, W), dtype=jnp.float32)
    params = {
        "gamma": 1.0 + 0.1 * jax.random.normal(keys[1], (C,), dtype=jnp.float32),
        "beta": 0.1 * jax.random.normal(keys[2], (C,), dtype=jnp.float32),
        "wq": 0.05 * jax.random.normal(keys[3], (C, C, 1, 1), dtype=jnp.float32),
        "bq": 0.05 * jax.random.normal(keys[4], (C,), dtype=jnp.float32),
        "wk": 0.05 * jax.random.normal(keys[5], (C, C, 1, 1), dtype=jnp.float32),
        "bk": 0.05 * jax.random.normal(keys[6], (C,), dtype=jnp.float32),
        "wv": 0.05 * jax.random.normal(keys[7], (C, C, 1, 1), dtype=jnp.float32),
        "bv": 0.05 * jax.random.normal(keys[8], (C,), dtype=jnp.float32),
        "wp": 0.05 * jax.random.normal(keys[9], (C, C, 1, 1), dtype=jnp.float32),
        "bp": 0.05 * jax.random.normal(keys[10], (C,), dtype=jnp.float32),
    }

    out = jax.block_until_ready(attn_block(x, params))
    ref = jax.block_until_ready(attn_block_reference(x, params))

    assert out.shape == x.shape and out.dtype == x.dtype
    # bf16 matmul inputs (f32 accumulation) -> compare against the f32 reference with
    # a bf16-appropriate tolerance.
    if not jnp.allclose(out, ref, rtol=2e-2, atol=2e-2):
        err = float(jnp.max(jnp.abs(out - ref)))
        raise AssertionError(f"Pallas AttnBlock output mismatch, max abs err = {err}")
    print("KERNEL_OK")
</pallas_src>

<mosaic_0001>
module attributes {stable_mosaic.version = 11 : i64} {
  func.func @groupnorm_stats_kernel(%arg0: i32, %arg1: i32, %arg2: memref<1x256x128xf32, #tpu.memory_space<vmem>>, %arg3: memref<128x128xf32, #tpu.memory_space<vmem>>, %arg4: memref<1x1x128xf32, #tpu.memory_space<vmem>>, %arg5: memref<1x1x128xf32, #tpu.memory_space<vmem>>, %arg6: memref<1x128xf32, #tpu.memory_space<vmem>>, %arg7: memref<1x128xf32, #tpu.memory_space<vmem>>) attributes {dimension_semantics = [#tpu.dimension_semantics<parallel>, #tpu.dimension_semantics<arbitrary>], iteration_bounds = array<i64: 2, 2>, scalar_prefetch = 0 : i64, scratch_operands = 2 : i64, tpu.core_type = #tpu.core_type<tc>, window_params = [{transform_indices = @transform_0, window_bounds = array<i64: 1, 256, 128>}, {pipeline_mode = #tpu.pipeline_mode<synchronous>, transform_indices = @transform_1, window_bounds = array<i64: 128, 128>}, {transform_indices = @transform_2, window_bounds = array<i64: 1, 1, 128>}, {transform_indices = @transform_3, window_bounds = array<i64: 1, 1, 128>}]} {
    %c0_i32 = arith.constant 0 : i32
    %0 = arith.cmpi eq, %arg1, %c0_i32 : i32
    %1 = arith.extui %0 : i1 to i32
    %c0_i32_0 = arith.constant 0 : i32
    %2 = arith.cmpi ne, %1, %c0_i32_0 : i32
    scf.if %2 {
      %cst_13 = arith.constant 0.000000e+00 : f32
      %19 = vector.broadcast %cst_13 : f32 to vector<1x128xf32>
      %c0_14 = arith.constant 0 : index
      %c0_15 = arith.constant 0 : index
      %20 = vector.load %arg6[%c0_14, %c0_15] : memref<1x128xf32, #tpu.memory_space<vmem>>, vector<1x128xf32>
      tpu.vector_store %arg6[%c0_14, %c0_15], %19 {strides = array<i32>} : memref<1x128xf32, #tpu.memory_space<vmem>>, vector<1x128xf32>,
      %cst_16 = arith.constant 0.000000e+00 : f32
      %21 = vector.broadcast %cst_16 : f32 to vector<1x128xf32>
      %c0_17 = arith.constant 0 : index
      %c0_18 = arith.constant 0 : index
      %22 = vector.load %arg7[%c0_17, %c0_18] : memref<1x128xf32, #tpu.memory_space<vmem>>, vector<1x128xf32>
      tpu.vector_store %arg7[%c0_17, %c0_18], %21 {strides = array<i32>} : memref<1x128xf32, #tpu.memory_space<vmem>>, vector<1x128xf32>,
    } else {
    }
    %c0 = arith.constant 0 : index
    %c0_1 = arith.constant 0 : index
    %c0_2 = arith.constant 0 : index
    %3 = vector.load %arg2[%c0, %c0_1, %c0_2] : memref<1x256x128xf32, #tpu.memory_space<vmem>>, vector<1x256x128xf32>
    %4 = vector.shape_cast %3 : vector<1x256x128xf32> to vector<256x128xf32>
    %c0_3 = arith.constant 0 : index
    %c0_4 = arith.constant 0 : index
    %5 = vector.load %arg6[%c0_3, %c0_4] : memref<1x128xf32, #tpu.memory_space<vmem>>, vector<1x128xf32>
    %cst = arith.constant dense<0.000000e+00> : vector<128xf32>
    %6 = vector.multi_reduction <add>, %4, %cst [0] : vector<256x128xf32> to vector<128xf32>
    %7 = vector.shape_cast %6 : vector<128xf32> to vector<1x128xf32>
    %8 = arith.addf %5, %7 : vector<1x128xf32>
    %c0_5 = arith.constant 0 : index
    %c0_6 = arith.constant 0 : index
    %9 = vector.load %arg6[%c0_5, %c0_6] : memref<1x128xf32, #tpu.memory_space<vmem>>, vector<1x128xf32>
    tpu.vector_store %arg6[%c0_5, %c0_6], %8 {strides = array<i32>} : memref<1x128xf32, #tpu.memory_space<vmem>>, vector<1x128xf32>,
    %c0_7 = arith.constant 0 : index
    %c0_8 = arith.constant 0 : index
    %10 = vector.load %arg7[%c0_7, %c0_8] : memref<1x128xf32, #tpu.memory_space<vmem>>, vector<1x128xf32>
    %11 = arith.mulf %4, %4 : vector<256x128xf32>
    %cst_9 = arith.constant dense<0.000000e+00> : vector<128xf32>
    %12 = vector.multi_reduction <add>, %11, %cst_9 [0] : vector<256x128xf32> to vector<128xf32>
    %13 = vector.shape_cast %12 : vector<128xf32> to vector<1x128xf32>
    %14 = arith.addf %10, %13 : vector<1x128xf32>
    %c0_10 = arith.constant 0 : index
    %c0_11 = arith.constant 0 : index
    %15 = vector.load %arg7[%c0_10, %c0_11] : memref<1x128xf32, #tpu.memory_space<vmem>>, vector<1x128xf32>
    tpu.vector_store %arg7[%c0_10, %c0_11], %14 {strides = array<i32>} : memref<1x128xf32, #tpu.memory_space<vmem>>, vector<1x128xf32>,
    %c1_i32 = arith.constant 1 : i32
    %16 = arith.cmpi eq, %arg1, %c1_i32 : i32
    %17 = arith.extui %16 : i1 to i32
    %c0_i32_12 = arith.constant 0 : i32
    %18 = arith.cmpi ne, %17, %c0_i32_12 : i32
    scf.if %18 {
      %c0_13 = arith.constant 0 : index
      %c0_14 = arith.constant 0 : index
      %19 = vector.load %arg3[%c0_13, %c0_14] : memref<128x128xf32, #tpu.memory_space<vmem>>, vector<128x128xf32>
      %c0_15 = arith.constant 0 : index
      %c0_16 = arith.constant 0 : index
      %20 = vector.load %arg6[%c0_15, %c0_16] : memref<1x128xf32, #tpu.memory_space<vmem>>, vector<1x128xf32>
      %cst_17 = arith.constant dense<0.000000e+00> : vector<1x128xf32>
      %21 = tpu.matmul %20, %19, %cst_17 {dimension_numbers = #tpu.dot_dimension_numbers<[1], [0], [0], [1], [0, 0, 1, 1], [], []>} : vector<1x128xf32>, vector<128x128xf32>, vector<1x128xf32> -> vector<1x128xf32>
      %c0_18 = arith.constant 0 : index
      %c0_19 = arith.constant 0 : index
      %22 = vector.load %arg7[%c0_18, %c0_19] : memref<1x128xf32, #tpu.memory_space<vmem>>, vector<1x128xf32>
      %cst_20 = arith.constant dense<0.000000e+00> : vector<1x128xf32>
      %23 = tpu.matmul %22, %19, %cst_20 {dimension_numbers = #tpu.dot_dimension_numbers<[1], [0], [0], [1], [0, 0, 1, 1], [], []>} : vector<1x128xf32>, vector<128x128xf32>, vector<1x128xf32> -> vector<1x128xf32>
      %cst_21 = arith.constant 9.765625E-4 : f32
      %24 = vector.broadcast %cst_21 : f32 to vector<1x128xf32>
      %25 = arith.mulf %21, %24 : vector<1x128xf32>
      %cst_22 = arith.constant 9.765625E-4 : f32
      %26 = vector.broadcast %cst_22 : f32 to vector<1x128xf32>
      %27 = arith.mulf %23, %26 : vector<1x128xf32>
      %28 = arith.mulf %25, %25 : vector<1x128xf32>
      %29 = arith.subf %27, %28 : vector<1x128xf32>
      %c0_23 = arith.constant 0 : index
      %c0_24 = arith.constant 0 : index
      %c0_25 = arith.constant 0 : index
      %30 = vector.load %arg4[%c0_23, %c0_24, %c0_25] : memref<1x1x128xf32, #tpu.memory_space<vmem>>, vector<1x1x128xf32>
      %31 = vector.shape_cast %30 : vector<1x1x128xf32> to vector<1x128xf32>
      %32 = vector.shape_cast %25 : vector<1x128xf32> to vector<1x1x128xf32>
      tpu.vector_store %arg4[%c0_23, %c0_24, %c0_25], %32 {strides = array<i32>} : memref<1x1x128xf32, #tpu.memory_space<vmem>>, vector<1x1x128xf32>,
      %cst_26 = arith.constant 9.99999997E-7 : f32
      %33 = vector.broadcast %cst_26 : f32 to vector<1x128xf32>
      %34 = arith.addf %29, %33 : vector<1x128xf32>
      %35 = math.rsqrt %34 : vector<1x128xf32>
      %c0_27 = arith.constant 0 : index
      %c0_28 = arith.constant 0 : index
      %c0_29 = arith.constant 0 : index
      %36 = vector.load %arg5[%c0_27, %c0_28, %c0_29] : memref<1x1x128xf32, #tpu.memory_space<vmem>>, vector<1x1x128xf32>
      %37 = vector.shape_cast %36 : vector<1x1x128xf32> to vector<1x128xf32>
      %38 = vector.shape_cast %35 : vector<1x128xf32> to vector<1x1x128xf32>
      tpu.vector_store %arg5[%c0_27, %c0_28, %c0_29], %38 {strides = array<i32>} : memref<1x1x128xf32, #tpu.memory_space<vmem>>, vector<1x1x128xf32>,
    } else {
    }
    return
  }
  func.func @transform_0(%arg0: i32, %arg1: i32) -> (i32, i32, i32) {
    %c0_i32 = arith.constant 0 : i32
    %c0_i32_0 = arith.constant 0 : i32
    return %arg0, %arg1, %c0_i32 : i32, i32, i32
  }
  func.func @transform_1(%arg0: i32, %arg1: i32) -> (i32, i32) {
    %c0_i32 = arith.constant 0 : i32
    %c0_i32_0 = arith.constant 0 : i32
    %c0_i32_1 = arith.constant 0 : i32
    return %c0_i32, %c0_i32_0 : i32, i32
  }
  func.func @transform_2(%arg0: i32, %arg1: i32) -> (i32, i32, i32) {
    %c0_i32 = arith.constant 0 : i32
    %c0_i32_0 = arith.constant 0 : i32
    %c0_i32_1 = arith.constant 0 : i32
    return %arg0, %c0_i32, %c0_i32_0 : i32, i32, i32
  }
  func.func @transform_3(%arg0: i32, %arg1: i32) -> (i32, i32, i32) {
    %c0_i32 = arith.constant 0 : i32
    %c0_i32_0 = arith.constant 0 : i32
    %c0_i32_1 = arith.constant 0 : i32
    return %arg0, %c0_i32, %c0_i32_0 : i32, i32, i32
  }
}

</mosaic_0001>

<bundles_post_ra>
// kernel: tpu_custom_call.1
= control target key start
LH: loop header
LB: loop body
LE: loop exit
PB: predicated region body
PF: predicated region fallthrough
CT: control target
= control target key end

     0   :  { %s1579_s0 = inlined_call_operand.hbm [shape: f32[2,512,128], index: 0, kind: input, shape index: {}]   ;;  %s1580_s1 = inlined_call_operand.hbm [shape: f32[128,128], index: 1, kind: input, shape index: {}]   ;;  %s1581_s2 = inlined_call_operand.hbm [shape: f32[2,1,128], index: 2, kind: output, shape index: {0}]   ;;  %s1582_s3 = inlined_call_operand.hbm [shape: f32[2,1,128], index: 3, kind: output, shape index: {1}]  }
   0x1   :  { %1596 = sst [smem:[#allocation20_spill]] %s1580_s1 }
   0x2   :  { %1597 = sst [smem:[#allocation21_spill]] %s1581_s2 }
   0x3   :  { %1598 = sst [smem:[#allocation22_spill]] %s1582_s3 }
   0x4   :  { %9 = vsyncpa [#allocation5], 0 }
   0x5   :  { %11 = vsyncpa [#allocation5 + $0x1], 0 }
   0x6   :  { %12 = vsyncpa [#allocation8], 0 }
   0x7   :  { %13 = vsyncpa [#allocation6], 0 }
   0x8   :  { %15 = vsyncpa [#allocation6 + $0x1], 0 }
   0x9   :  { %16 = vsyncpa [#allocation11], 0 }
   0xa   :  { %18 = vsyncpa [#allocation11 + $0x1], 0  ;;  %s1242_s12 = smov 0   ;;  %s1244_s13 = smov 0  }
   0xb   :  { %s1246_s14 = smov 0   ;;  %s1248_s15 = smov 0  }
   0xc   :  { %s1250_s16 = smov 0   ;;  %s1252_s17 = smov 0  }
   0xd   :  { %s1254_s18 = smov 0   ;;  %s1256_s19 = smov 0  }
   0xe   :  { %s1258_s20 = smov 0   ;;  %s1260_s21 = smov 0  }
   0xf   :  { %s1262_s22 = smov 0  }
  0x10 LB: > { %1599 = sst [smem:[#allocation16_spill]] %s1170_s12  ;;  %s698_s23 = sadd.s32 4294967295, %s1210_s22   ;;  %s1210_s22 = sphi %s1262_s22, %s24_s22   ;;  %s1206_s21 = sphi %s1260_s21, %s1634_s21   ;;  %s1202_s20 = sphi %s1258_s20, %s1633_s20   ;;  %s1198_s19 = sphi %s1256_s19, %s1632_s19   ;;  %s1194_s18 = sphi %s1254_s18, %s1631_s18   ;;  %s1190_s17 = sphi %s1252_s17, %s1630_s17   ;;  %s1186_s16 = sphi %s1250_s16, %s1629_s16   ;;  %s1182_s15 = sphi %s1248_s15, %s1628_s15   ;;  %s1178_s14 = sphi %s1246_s14, %s1627_s14   ;;  %s1174_s13 = sphi %s1244_s13, %s1626_s13   ;;  %s1170_s12 = sphi %s1242_s12, %s1625_s12  }
  0x11   : > { %s699_s24 = sadd.s32 4294967294, %s1210_s22   ;;  %p58_p0 = scmp.ne.s32.totalorder %s1186_s16, %s1182_s15 }
  0x12   : > { %p1298_p1 = scmp.eq.s32.totalorder %s698_s23, 0  ;;  %s92_s26 = sadd.s32 1, %s1178_s14 }
  0x13   : > { %p102_p2 = scmp.ne.s32.totalorder %s1178_s14, %s1174_s13  ;;  %p103_p4 = scmp.eq.s32.totalorder %s698_s23, 3 }
  0x14   : > { %s1600_s25 = scalar_select %p1298_p1, 1, 0 }
  0x15   : > { %p1307_p3 = por %p1298_p1, %p58_p0  ;;  %p108_p5 = scmp.ne.s32.totalorder %s1174_s13, %s1170_s12 }
  0x16   : > { %p109_p6 = scmp.eq.s32.totalorder %s699_s24, 3  ;;  %p1313_p7 = por %p103_p4, %p102_p2 }
  0x17   : > { %s1601_s27 = scalar_select %p1307_p3, 1, 0 }
  0x18   : > { %s1602_s28 = scalar_select %p1313_p7, 1, 0 }
  0x19   : > { %p700_p8 = scmp.ge.s32.totalorder %s1210_s22, 1  ;;  %p1318_p9 = por %p109_p6, %p108_p5 }
  0x1a   : > { %p142_p10 = scmp.lt.s32.totalorder %s1210_s22, 5  ;;  %s1212_s4 = smov [#allocation7]  }
  0x1b   : > { %s1603_s29 = scalar_select %p1318_p9, 1, 0 }
  0x1c   : > { %p1323_p11 = pnand %p700_p8, %p142_p10  ;;  %s154_s5 = sshll.u32 %s1212_s4, 4  ;;  %s155_s5 = int_to_ptr.vmem [resolvable:$true] %s154_s5 }
  0x1d   : > { %1604 = sst [smem:[#allocation17_spill]] %s1603_s29  ;;  %s1607_s1 = sld [smem:[#allocation20_spill]] }
  0x1e   : > { %s1605_s30 = scalar_select %p1323_p11, 1, 0 }
  0x1f   : > { %p878_p12 = pneg %p1323_p11 }
  0x21   : > { %p1331_p13 = pnand %p878_p12, %p1298_p1 }
  0x23   : > { %s994_s9 = scalar_lea.hbm %s1607_s1, 2048  ;;  %p996_p2 = pneg %p1331_p13 }
  0x24   : > { %p995_p0 = scmp.ne.s32.totalorder %s1607_s1, %s994_s9  ;;  %p1001_p6 = scmp.lt.u32.totalorder %s994_s9, %s1607_s1 }
  0x26   : > { %p997_p4 = pnand %p996_p2, %p995_p0 }
  0x28   : > { %p998_p5 = pneg %p997_p4 }
  0x2a   : > { %p1003_p8 = pnand %p1001_p6, %p998_p5 }
  0x2c   : > { %1006 = shalt.err (!%p1003_p8)
}
  0x2d   : > { %s1007_s24 = scalar_lea.vmem %s155_s5, 2048  ;;  %p1015_p7 = scmp.lt.s32.totalorder %s155_s5, %s155_s5 }
  0x2e   : > { %p1008_p10 = scmp.ne.s32.totalorder %s155_s5, %s1007_s24  ;;  %p1016_p1 = scmp.lt.s32.totalorder %s1007_s24, %s1007_s24 }
  0x30   : > { %p1010_p12 = pnand %p1008_p10, %p996_p2  ;;  %p1017_p3 = por %p1016_p1, %p1015_p7 }
  0x32   : > { %p1011_p9 = pneg %p1010_p12 }
  0x34   : > { %p1018_p11 = pnand %p1017_p3, %p1011_p9 }
  0x36   : > { %1021 = shalt.err (!%p1018_p11)
}
  0x37   : > { %s1588_s4 = smov 128   ;;  %s1589_s7 = smov 8  }
  0x38   : > { %881 = dma.hbm_to_vmem [thread:$0]  (!%p1331_p13), %s1607_s1, 2048, %s155_s5, [#allocation8], %s1588_s4, %s1588_s4, %s1589_s7  }
  0x39   : > { %s33_s10 = sadd.s32 1, %s1202_s20  ;;  %s36_s11 = sadd.s32 1, %s1206_s21 }
  0x3a   : > { %p34_p1 = scmp.ge.s32.totalorder %s33_s10, 2  ;;  %s45_s15 = sadd.s32 1, %s1190_s17 }
  0x3b   : > { %p52_p3 = scmp.ne.s32.totalorder %s1190_s17, %s1186_s16  ;;  %p53_p7 = scmp.eq.s32.totalorder %s1210_s22, 0 }
  0x3c   : > { %s1636_s10 = smov (%p34_p1, %s33_s10), 0  ;;  %s1638_s11 = smov (!%p34_p1, %s36_s11), %s1206_s21 }
  0x3d   : > { %1608 = sst [smem:[#allocation18_spill]] %s1636_s10  ;;  %s41_s6 = ssub.s32 %s1202_s20, %s1636_s10 }
  0x3e   : > { %p38_p9 = scmp.ge.s32.totalorder %s1638_s11, 2  ;;  %p894_p11 = scmp.lt.s32.totalorder %s1210_s22, 4 }
  0x3f   : > { %p1366_p13 = por %p53_p7, %p52_p3  ;;  %s168_s23 = sand.u32 1, %s1190_s17  }
  0x40   : > { %s1640_s11 = smov (%p38_p9, %s1638_s11), 0  ;;  %s703_s24 = sshll.u32 %s168_s23, 8 }
  0x41   : > { %1610 = sst [smem:[#allocation19_spill]] %s1640_s11  ;;  %s40_s8 = ssub.s32 %s1206_s21, %s1640_s11 }
  0x42   : > { %s42_s9 = sor.u32 %s41_s6, %s40_s8  ;;  %p90_p0 = scmp.eq.s32.totalorder %s40_s8, 0 }
  0x43   : > { %p43_p2 = scmp.eq.s32.totalorder %s42_s9, 0  ;;  %s704_s4 = sshll.u32 %s1202_s20, 5 }
  0x44   : > { %s1379_s7 = scalar_select %p90_p0, %s1178_s14, %s92_s26  }
  0x45   : > { %s1382_s1 = scalar_select %p43_p2, %s1190_s17, %s45_s15  }
  0x46   : > { %s705_s10 = sshll.u32 %s1206_s21, 6  ;;  %s172_s29 = scalar_lea.vmem [#allocation4], %s703_s24 }
  0x47   : > { %s181_s12 = sshll.u32 %s172_s29, 4  ;;  %s178_s3 = sadd.s32 %s705_s10, %s704_s4  ;;  %s1385_s12 = int_to_ptr.vmem [resolvable:$true] %s181_s12 }
  0x48   : > { %s706_s2 = sshll.u32 %s178_s3, 7  ;;  %p1391_p4 = pnand %p894_p11, %p1366_p13 }
  0x49   : > { %s1398_s26 = scalar_lea.hbm %s1579_s0, %s706_s2  ;;  %s1400_s29 = scalar_lea.sflag [#allocation5], %s168_s23 }
  0x4a   : > { %s1022_s3 = scalar_lea.hbm %s1398_s26, 4096  ;;  %p1024_p6 = pneg %p1391_p4 }
  0x4b   : > { %p1023_p5 = scmp.ne.s32.totalorder %s1398_s26, %s1022_s3  ;;  %s1027_s15 = scalar_lea.hbm %s1579_s0, 16384 }
  0x4c   : > { %p1028_p12 = scmp.lt.u32.totalorder %s1398_s26, %s1579_s0  ;;  %p1029_p1 = scmp.lt.u32.totalorder %s1027_s15, %s1022_s3 }
  0x4d   : > { %p1025_p8 = pnand %p1024_p6, %p1023_p5  ;;  %p1031_p7 = scmp.lt.u32.totalorder %s1022_s3, %s1398_s26 }
  0x4e   : > { %p1030_p3 = por %p1029_p1, %p1028_p12 }
  0x4f   : > { %p1026_p10 = pneg %p1025_p8 }
  0x50   : > { %p1032_p9 = por %p1031_p7, %p1030_p3 }
  0x52   : > { %p1033_p11 = pnand %p1032_p9, %p1026_p10 }
  0x54   : > { %1036 = shalt.err (!%p1033_p11)
}
  0x55   : > { %s1037_s23 = scalar_lea.vmem %s1385_s12, 4096  ;;  %s1215_s24 = smov [#allocation4]  }
  0x56   : > { %p1038_p13 = scmp.ne.s32.totalorder %s1385_s12, %s1037_s23  ;;  %s1042_s9 = sshll.u32 %s1215_s24, 4  ;;  %s1043_s9 = int_to_ptr.vmem [resolvable:$false] %s1042_s9 }
  0x57   : > { %s1044_s6 = scalar_lea.vmem %s1043_s9, 8192  ;;  %p1045_p5 = scmp.lt.s32.totalorder %s1385_s12, %s1043_s9 }
  0x58   : > { %p1040_p0 = pnand %p1038_p13, %p1024_p6  ;;  %p1046_p8 = scmp.lt.s32.totalorder %s1044_s6, %s1037_s23 }
  0x5a   : > { %p1041_p2 = pneg %p1040_p0  ;;  %p1047_p12 = por %p1046_p8, %p1045_p5 }
  0x5c   : > { %p1048_p1 = pnand %p1047_p12, %p1041_p2 }
  0x5e   : > { %1051 = shalt.err (!%p1048_p1)
}
  0x5f   : > { %s1612_s8 = smov 8   ;;  %s1613_s3 = smov 128  }
  0x60   : > { %885 = dma.hbm_to_vmem [thread:$0]  (!%p1391_p4), %s1398_s26, 4096, %s1385_s12, %s1400_s29, %s1613_s3, %s1613_s3, %s1612_s8  }
  0x61   : > { %p1614_p6 = scmp.ne.s32.totalorder %s1605_s30, 0 }
  0x62   : > { %s195_s4 = sand.u32 (!%p1614_p6), 1, %s1186_s16   ;;  %p1615_p10 = scmp.ne.s32.totalorder (!%p1614_p6), %s1601_s27, 0 }
  0x63   : > { %193 = sbr.rel (%p1614_p6) target bundleno = 486 (0x1e6), region = 28  ;;  %s708_s10 = sshll.u32 (!%p1614_p6), %s195_s4, 8 }
  0x64   : > { %s196_s15 = scalar_lea.sflag (!%p1614_p6), [#allocation5], %s195_s4  ;;  %s1434_s2 = scalar_lea.vmem (!%p1614_p6), [#allocation4], %s708_s10 }
  0x6a   : > { %1153 = dma.done.wait (%p1615_p10), %s196_s15, 4096  }
  0x6b   : > { %1155 = vsyncadd (%p1615_p10), %s196_s15, 4294963200  ;;  %p1616_p3 = scmp.ne.s32.totalorder %s1600_s25, 0 }
  0x6d   : > { %1157 = dma.done.wait (%p1616_p3), [#allocation8], 2048  }
  0x6e   : > { %1159 = vsyncadd (%p1616_p3), [#allocation8], 4294965248  ;;  %s1445_s12 = sand.u32 1, %s1174_s13   ;;  %p710_p4 = scmp.ne.s32.totalorder %s1194_s18, 0 }
  0x6f   : > { %s222_s30 = scalar_lea.vmem [#allocation9], %s1445_s12  ;;  %s228_s11 = scalar_lea.vmem [#allocation10], %s1445_s12  ;;  %v1216_v0 = vmov (!%p710_p4), 0.0  }
  0x70   : > { %233 = sbr.rel (%p710_p4) target bundleno = 119 (0x77), region = 40  ;;  %234 = vst [vmem:[#allocation2] sm:$0x1] (!%p710_p4), %v1216_v0  ;;  %235 = vst [vmem:[#allocation3] sm:$0x1] (!%p710_p4), %v1216_v0 }
  0x77 PF: > { %v236_v1 = vld [vmem:[%s1434_s2] sm:$0xff]  ;;  %v237_v2 = vld [vmem:[%s1434_s2 + $0x8] sm:$0xff]  ;;  %v238_v3 = vld [vmem:[%s1434_s2 + $0x10] sm:$0xff]  ;;  %p711_p7 = scmp.ne.s32.totalorder %s1194_s18, 1 }
  0x78   : > { %v239_v4 = vld [vmem:[%s1434_s2 + $0x18] sm:$0xff]  ;;  %v269_v5 = vadd.f32 %v237_v2, %v236_v1  ;;  %v309_v6 = vmul.f32 %v236_v1, %v236_v1  ;;  %v310_v7 = vmul.f32 %v237_v2, %v237_v2  ;;  %v311_v8 = vmul.f32 %v238_v3, %v238_v3  ;;  %v240_v9 = vld [vmem:[%s1434_s2 + $0x20] sm:$0xff]  ;;  %v241_v13 = vld [vmem:[%s1434_s2 + $0x28] sm:$0xff] }
  0x79   : > { %v312_v11 = vmul.f32 %v239_v4, %v239_v4  ;;  %v313_v15 = vmul.f32 %v240_v9, %v240_v9  ;;  %v242_v17 = vld [vmem:[%s1434_s2 + $0x30] sm:$0xff]  ;;  %v314_v19 = vmul.f32 %v241_v13, %v241_v13  ;;  %v243_v21 = vld [vmem:[%s1434_s2 + $0x38] sm:$0xff]  ;;  %v244_v25 = vld [vmem:[%s1434_s2 + $0x40] sm:$0xff]  ;;  %vm1218_vm0 = vmmov (!%p711_p7), 0  }
  0x7a   : > { %v270_v10 = vadd.f32 %v269_v5, %v238_v3  ;;  %v341_v12 = vadd.f32 %v310_v7, %v309_v6  ;;  %v315_v23 = vmul.f32 %v242_v17, %v242_v17  ;;  %v316_v27 = vmul.f32 %v243_v21, %v243_v21  ;;  %v245_v29 = vld [vmem:[%s1434_s2 + $0x48] sm:$0xff]  ;;  %v246_v33 = vld [vmem:[%s1434_s2 + $0x50] sm:$0xff]  ;;  %v247_v37 = vld [vmem:[%s1434_s2 + $0x58] sm:$0xff] }
  0x7b   : > { %v317_v31 = vmul.f32 %v244_v25, %v244_v25  ;;  %v318_v35 = vmul.f32 %v245_v29, %v245_v29  ;;  %v319_v39 = vmul.f32 %v246_v33, %v246_v33  ;;  %v248_v41 = vld [vmem:[%s1434_s2 + $0x60] sm:$0xff]  ;;  %v320_v43 = vmul.f32 %v247_v37, %v247_v37  ;;  %v249_v45 = vld [vmem:[%s1434_s2 + $0x68] sm:$0xff]  ;;  %v250_v49 = vld [vmem:[%s1434_s2 + $0x70] sm:$0xff] }
  0x7c   : > { %v271_v14 = vadd.f32 %v270_v10, %v239_v4  ;;  %v342_v16 = vadd.f32 %v341_v12, %v311_v8  ;;  %v321_v47 = vmul.f32 %v248_v41, %v248_v41  ;;  %v322_v51 = vmul.f32 %v249_v45, %v249_v45  ;;  %v251_v53 = vld [vmem:[%s1434_s2 + $0x78] sm:$0xff]  ;;  %v252_v57 = vld [vmem:[%s1434_s2 + $0x80] sm:$0xff]  ;;  %v253_v61 = vld [vmem:[%s1434_s2 + $0x88] sm:$0xff] }
  0x7d   : > { %v323_v55 = vmul.f32 %v250_v49, %v250_v49  ;;  %v324_v59 = vmul.f32 %v251_v53, %v251_v53  ;;  %v325_v63 = vmul.f32 %v252_v57, %v252_v57  ;;  %v254_v1 = vld [vmem:[%s1434_s2 + $0x90] sm:$0xff]  ;;  %v326_v3 = vmul.f32 %v253_v61, %v253_v61  ;;  %v255_v5 = vld [vmem:[%s1434_s2 + $0x98] sm:$0xff] }
  0x7e   : > { %v272_v18 = vadd.f32 %v271_v14, %v240_v9  ;;  %v343_v20 = vadd.f32 %v342_v16, %v312_v11  ;;  %v327_v7 = vmul.f32 %v254_v1, %v254_v1  ;;  %v256_v9 = vld [vmem:[%s1434_s2 + $0xa0] sm:$0xff]  ;;  %v328_v11 = vmul.f32 %v255_v5, %v255_v5 }
  0x80   : > { %v273_v22 = vadd.f32 %v272_v18, %v241_v13  ;;  %v344_v24 = vadd.f32 %v343_v20, %v313_v15  ;;  %v257_v13 = vld [vmem:[%s1434_s2 + $0xa8] sm:$0xff]  ;;  %v329_v15 = vmul.f32 %v256_v9, %v256_v9 }
  0x82   : > { %v274_v26 = vadd.f32 %v273_v22, %v242_v17  ;;  %v345_v28 = vadd.f32 %v344_v24, %v314_v19  ;;  %v258_v17 = vld [vmem:[%s1434_s2 + $0xb0] sm:$0xff]  ;;  %v330_v19 = vmul.f32 %v257_v13, %v257_v13 }
  0x84   : > { %v275_v30 = vadd.f32 %v274_v26, %v243_v21  ;;  %v346_v32 = vadd.f32 %v345_v28, %v315_v23  ;;  %v259_v21 = vld [vmem:[%s1434_s2 + $0xb8] sm:$0xff]  ;;  %v331_v23 = vmul.f32 %v258_v17, %v258_v17 }
  0x86   : > { %v276_v34 = vadd.f32 %v275_v30, %v244_v25  ;;  %v347_v36 = vadd.f32 %v346_v32, %v316_v27  ;;  %v260_v25 = vld [vmem:[%s1434_s2 + $0xc0] sm:$0xff]  ;;  %v332_v27 = vmul.f32 %v259_v21, %v259_v21 }
  0x88   : > { %v277_v38 = vadd.f32 %v276_v34, %v245_v29  ;;  %v348_v40 = vadd.f32 %v347_v36, %v317_v31  ;;  %v261_v29 = vld [vmem:[%s1434_s2 + $0xc8] sm:$0xff]  ;;  %v333_v31 = vmul.f32 %v260_v25, %v260_v25 }
  0x8a   : > { %v278_v42 = vadd.f32 %v277_v38, %v246_v33  ;;  %v349_v44 = vadd.f32 %v348_v40, %v318_v35  ;;  %v262_v33 = vld [vmem:[%s1434_s2 + $0xd0] sm:$0xff]  ;;  %v334_v35 = vmul.f32 %v261_v29, %v261_v29 }
  0x8c   : > { %v279_v46 = vadd.f32 %v278_v42, %v247_v37  ;;  %v350_v48 = vadd.f32 %v349_v44, %v319_v39  ;;  %v263_v37 = vld [vmem:[%s1434_s2 + $0xd8] sm:$0xff]  ;;  %v335_v39 = vmul.f32 %v262_v33, %v262_v33 }
  0x8e   : > { %v280_v50 = vadd.f32 %v279_v46, %v248_v41  ;;  %v351_v52 = vadd.f32 %v350_v48, %v320_v43  ;;  %v264_v41 = vld [vmem:[%s1434_s2 + $0xe0] sm:$0xff]  ;;  %v336_v43 = vmul.f32 %v263_v37, %v263_v37 }
  0x90   : > { %v281_v54 = vadd.f32 %v280_v50, %v249_v45  ;;  %v352_v56 = vadd.f32 %v351_v52, %v321_v47  ;;  %v265_v45 = vld [vmem:[%s1434_s2 + $0xe8] sm:$0xff]  ;;  %v337_v47 = vmul.f32 %v264_v41, %v264_v41 }
  0x92   : > { %v282_v58 = vadd.f32 %v281_v54, %v250_v49  ;;  %v353_v60 = vadd.f32 %v352_v56, %v322_v51  ;;  %v266_v49 = vld [vmem:[%s1434_s2 + $0xf0] sm:$0xff]  ;;  %v338_v51 = vmul.f32 %v265_v45, %v265_v45 }
  0x94   : > { %v283_v62 = vadd.f32 %v282_v58, %v251_v53  ;;  %v354_v0 = vadd.f32 %v353_v60, %v323_v55  ;;  %v267_v53 = vld [vmem:[%s1434_s2 + $0xf8] sm:$0xff]  ;;  %v339_v55 = vmul.f32 %v266_v49, %v266_v49 }
  0x95   : > { %v340_v58 = vmul.f32 %v267_v53, %v267_v53 }
  0x96   : > { %v284_v2 = vadd.f32 %v283_v62, %v252_v57  ;;  %v355_v4 = vadd.f32 %v354_v0, %v324_v59 }
  0x98   : > { %v285_v6 = vadd.f32 %v284_v2, %v253_v61  ;;  %v356_v8 = vadd.f32 %v355_v4, %v325_v63 }
  0x9a   : > { %v286_v10 = vadd.f32 %v285_v6, %v254_v1  ;;  %v357_v12 = vadd.f32 %v356_v8, %v326_v3 }
  0x9c   : > { %v287_v14 = vadd.f32 %v286_v10, %v255_v5  ;;  %v358_v16 = vadd.f32 %v357_v12, %v327_v7  ;;  %v268_v7 = vld [vmem:[#allocation2] sm:$0x1]  ;;  %v308_v12 = vld [vmem:[#allocation3] sm:$0x1] }
  0x9e   : > { %v288_v18 = vadd.f32 %v287_v14, %v256_v9  ;;  %v359_v20 = vadd.f32 %v358_v16, %v328_v11  ;;  %v385_v16 = vld [vmem:[#allocation7 + $0x8] sm:$0xff] (!%p711_p7) }
  0xa0   : > { %v289_v22 = vadd.f32 %v288_v18, %v257_v13  ;;  %v360_v24 = vadd.f32 %v359_v20, %v329_v15  ;;  %v384_v15 = vld [vmem:[#allocation7] sm:$0xff] (!%p711_p7)  ;;  %v1217_v18 = vmov (!%p711_p7), 0.0|0.0   ;;  %v387_v20 = vld [vmem:[#allocation7 + $0x18] sm:$0xff] (!%p711_p7) }
  0xa1   : > { %820 = vmatprep.subr.bf16.mxu0 (!%p711_p7), %v1217_v18  ;;  %844 = vmatprep.subr.bf16.mxu1 (!%p711_p7), %v1217_v18 }
  0xa2   : > { %v290_v26 = vadd.f32 %v289_v22, %v258_v17  ;;  %v361_v28 = vadd.f32 %v360_v24, %v330_v19  ;;  %v386_v17 = vld [vmem:[#allocation7 + $0x10] sm:$0xff] (!%p711_p7)  ;;  %v821_v19 = vpack.c.bf16 (!%p711_p7), %v385_v16, %v384_v15  ;;  %v389_v24 = vld [vmem:[#allocation7 + $0x28] sm:$0xff] (!%p711_p7) }
  0xa3   : > { %v824_v22 = vpack.c.bf16 (!%p711_p7), %v387_v20, %v386_v17 }
  0xa4   : > { %v291_v30 = vadd.f32 %v290_v26, %v259_v21  ;;  %v362_v32 = vadd.f32 %v361_v28, %v331_v23  ;;  %v1219_v21 = vmov (!%p711_p7), 0.0   ;;  %822 = vmatpush3.bf16.msra.mxu0 (!%p711_p7), %v821_v19  ;;  %846 = vmatpush3.bf16.msra.mxu1 (!%p711_p7), %v821_v19  ;;  %v388_v23 = vld [vmem:[#allocation7 + $0x20] sm:$0xff] (!%p711_p7)  ;;  %v390_v26 = vld [vmem:[#allocation7 + $0x30] sm:$0xff] (!%p711_p7) }
  0xa5   : > { %782 = vmatprep.mubr.msk.f32.mxu0 (!%p711_p7), %vm1218_vm0, %v1219_v21  ;;  %817 = vmatprep.mubr.msk.f32.mxu1 (!%p711_p7), %vm1218_vm0, %v1219_v21 }
  0xa6   : > { %v292_v34 = vadd.f32 %v291_v30, %v260_v25  ;;  %v363_v36 = vadd.f32 %v362_v32, %v332_v27  ;;  %823 = vmatprep.subr.bf16.mxu0 (!%p711_p7), %v1217_v18  ;;  %847 = vmatprep.subr.bf16.mxu1 (!%p711_p7), %v1217_v18  ;;  %v827_v25 = vpack.c.bf16 (!%p711_p7), %v389_v24, %v388_v23  ;;  %v391_v27 = vld [vmem:[#allocation7 + $0x38] sm:$0xff] (!%p711_p7)  ;;  %v393_v30 = vld [vmem:[#allocation7 + $0x48] sm:$0xff] (!%p711_p7)  ;;  %v394_v32 = vld [vmem:[#allocation7 + $0x50] sm:$0xff] (!%p711_p7) }
  0xa7   : > { %v830_v28 = vpack.c.bf16 (!%p711_p7), %v391_v27, %v390_v26 }
  0xa8   : > { %v293_v38 = vadd.f32 %v292_v34, %v261_v29  ;;  %v364_v40 = vadd.f32 %v363_v36, %v333_v31  ;;  %825 = vmatpush3.bf16.msra.mxu0 (!%p711_p7), %v824_v22  ;;  %849 = vmatpush3.bf16.msra.mxu1 (!%p711_p7), %v824_v22  ;;  %v392_v29 = vld [vmem:[#allocation7 + $0x40] sm:$0xff] (!%p711_p7)  ;;  %v397_v36 = vld [vmem:[#allocation7 + $0x68] sm:$0xff] (!%p711_p7) }
  0xa9   : > { %826 = vmatprep.subr.bf16.mxu0 (!%p711_p7), %v1217_v18  ;;  %850 = vmatprep.subr.bf16.mxu1 (!%p711_p7), %v1217_v18  ;;  %v833_v31 = vpack.c.bf16 (!%p711_p7), %v393_v30, %v392_v29 }
  0xaa   : > { %v294_v42 = vadd.f32 %v293_v38, %v262_v33  ;;  %v365_v44 = vadd.f32 %v364_v40, %v334_v35  ;;  %v395_v33 = vld [vmem:[#allocation7 + $0x58] sm:$0xff] (!%p711_p7)  ;;  %v396_v35 = vld [vmem:[#allocation7 + $0x60] sm:$0xff] (!%p711_p7)  ;;  %v398_v38 = vld [vmem:[#allocation7 + $0x70] sm:$0xff] (!%p711_p7) }
  0xab   : > { %v836_v34 = vpack.c.bf16 (!%p711_p7), %v395_v33, %v394_v32 }
  0xac   : > { %v295_v46 = vadd.f32 %v294_v42, %v263_v37  ;;  %v366_v48 = vadd.f32 %v365_v44, %v335_v39  ;;  %828 = vmatpush3.bf16.msra.mxu0 (!%p711_p7), %v827_v25  ;;  %852 = vmatpush3.bf16.msra.mxu1 (!%p711_p7), %v827_v25  ;;  %v839_v37 = vpack.c.bf16 (!%p711_p7), %v397_v36, %v396_v35  ;;  %v399_v39 = vld [vmem:[#allocation7 + $0x78] sm:$0xff] (!%p711_p7) }
  0xad   : > { %829 = vmatprep.subr.bf16.mxu0 (!%p711_p7), %v1217_v18  ;;  %853 = vmatprep.subr.bf16.mxu1 (!%p711_p7), %v1217_v18  ;;  %v842_v40 = vpack.c.bf16 (!%p711_p7), %v399_v39, %v398_v38 }
  0xae   : > { %v296_v50 = vadd.f32 %v295_v46, %v264_v41  ;;  %v367_v52 = vadd.f32 %v366_v48, %v336_v43 }
  0xb0   : > { %v297_v54 = vadd.f32 %v296_v50, %v265_v45  ;;  %v368_v56 = vadd.f32 %v367_v52, %v337_v47  ;;  %831 = vmatpush3.bf16.msra.mxu0 (!%p711_p7), %v830_v28  ;;  %855 = vmatpush3.bf16.msra.mxu1 (!%p711_p7), %v830_v28 }
  0xb1   : > { %832 = vmatprep.subr.bf16.mxu0 (!%p711_p7), %v1217_v18  ;;  %856 = vmatprep.subr.bf16.mxu1 (!%p711_p7), %v1217_v18 }
  0xb2   : > { %v298_v57 = vadd.f32 %v297_v54, %v266_v49  ;;  %v369_v59 = vadd.f32 %v368_v56, %v338_v51 }
  0xb4   : > { %v299_v60 = vadd.f32 %v298_v57, %v267_v53  ;;  %v370_v61 = vadd.f32 %v369_v59, %v339_v55  ;;  %834 = vmatpush3.bf16.msra.mxu0 (!%p711_p7), %v833_v31  ;;  %858 = vmatpush3.bf16.msra.mxu1 (!%p711_p7), %v833_v31 }
  0xb5   : > { %835 = vmatprep.subr.bf16.mxu0 (!%p711_p7), %v1217_v18  ;;  %859 = vmatprep.subr.bf16.mxu1 (!%p711_p7), %v1217_v18 }
  0xb6   : > { %v300_v62 = vrot.slane %v299_v60, 4  ;;  %v371_v63 = vadd.f32 %v370_v61, %v340_v58 }
  0xb8   : > { %v301_v0 = vadd.f32 %v300_v62, %v299_v60  ;;  %v372_v1 = vrot.slane %v371_v63, 4  ;;  %837 = vmatpush3.bf16.msra.mxu0 (!%p711_p7), %v836_v34  ;;  %861 = vmatpush3.bf16.msra.mxu1 (!%p711_p7), %v836_v34 }
  0xb9   : > { %838 = vmatprep.subr.bf16.mxu0 (!%p711_p7), %v1217_v18  ;;  %862 = vmatprep.subr.bf16.mxu1 (!%p711_p7), %v1217_v18 }
  0xba   : > { %v302_v2 = vrot.slane %v301_v0, 2  ;;  %v373_v3 = vadd.f32 %v372_v1, %v371_v63 }
  0xbc   : > { %v303_v4 = vadd.f32 %v302_v2, %v301_v0  ;;  %v374_v5 = vrot.slane %v373_v3, 2  ;;  %840 = vmatpush3.bf16.msra.mxu0 (!%p711_p7), %v839_v37  ;;  %864 = vmatpush3.bf16.msra.mxu1 (!%p711_p7), %v839_v37 }
  0xbd   : > { %841 = vmatprep.subr.bf16.mxu0 (!%p711_p7), %v1217_v18  ;;  %865 = vmatprep.subr.bf16.mxu1 (!%p711_p7), %v1217_v18 }
  0xbe   : > { %v304_v6 = vrot.slane %v303_v4, 1  ;;  %v375_v8 = vadd.f32 %v374_v5, %v373_v3 }
  0xc0   : > { %v305_v9 = vadd.f32 %v304_v6, %v303_v4  ;;  %v376_v10 = vrot.slane %v375_v8, 1  ;;  %383 = sbr.rel (%p711_p7) target bundleno = 436 (0x1b4), region = 44  ;;  %843 = vmatpush3.bf16.msra.mxu0 (!%p711_p7), %v842_v40  ;;  %867 = vmatpush3.bf16.msra.mxu1 (!%p711_p7), %v842_v40 }
  0xc2   : > { %v306_v11 = vadd.f32 %v305_v9, %v268_v7  ;;  %v377_v13 = vadd.f32 %v376_v10, %v375_v8 }
  0xc4   : > { %307 = vst [vmem:[#allocation2] sm:$0x1] %v306_v11  ;;  %v378_v14 = vadd.f32 %v377_v13, %v308_v12 }
  0xc6   : > { %379 = vst [vmem:[#allocation3] sm:$0x1] %v378_v14 }
  0xcb   : > { %v400_v41 = vld [vmem:[#allocation2] sm:$0x1] }
  0xcc   : > { %783 = vmatmul.mubr.f32.vlgmr.msra.gmra.mrb[0].mxu0 %v400_v41 }
  0xcd   : > { %v471_v42 = vld [vmem:[#allocation3] sm:$0x1] }
  0xce   : > { %818 = vmatmul.mubr.f32.vlgmr.msra.gmra.mrb[0].mxu1 %v471_v42 }
 0x19f   : > { %v467_v43 = vpop.f32.mrb[0].mxu0 }
 0x1a0   : > { %v542_v45 = vmul.f32 0.0009765625, %v467_v43  ;;  %v784_v46 = vpop.f32.mrb[1].mxu0 }
 0x1a1   : > { %v538_v44 = vpop.f32.mrb[0].mxu1 }
 0x1a2   : > { %v543_v47 = vmul.f32 0.0009765625, %v538_v44  ;;  %v819_v48 = vpop.f32.mrb[1].mxu1  ;;  %v544_v49 = vmul.f32 %v542_v45, %v542_v45  ;;  %546 = vst [vmem:[%s222_s30] sm:$0x1] %v542_v45 }
 0x1a4   : > { %v545_v50 = vsub.f32 %v543_v47, %v544_v49 }
 0x1a6   : > { %v547_v51 = vadd.f32 1e-06, %v545_v50 }
 0x1a8   : > { %992 = vrsqrt.f32 %v547_v51 }
 0x1b2   : > { %v993_v52 = vpop.eup %992 }
 0x1b3   : > { %549 = vst [vmem:[%s228_s11] sm:$0x1] %v993_v52 }
 0x1b4 PF: > { %s712_s18 = sshll.u32 %s1198_s19, 4  ;;  %s1617_s26 = sld [smem:[#allocation21_spill]] }
 0x1b5   : > { %s567_s5 = sshll.u32 %s222_s30, 4  ;;  %s551_s23 = scalar_lea.sflag [#allocation6], %s1445_s12  ;;  %s568_s5 = int_to_ptr.vmem [resolvable:$true] %s567_s5 }
 0x1b6   : > { %s1052_s24 = scalar_lea.vmem %s568_s5, 16  ;;  %p1618_p11 = scmp.ne.s32.totalorder %s1602_s28, 0 }
 0x1b7   : > { %p1053_p9 = scmp.ne.s32.totalorder %s568_s5, %s1052_s24  ;;  %s1220_s9 = smov [#allocation9]  }
 0x1b8   : > { %s1056_s6 = sshll.u32 %s1220_s9, 4  ;;  %s1057_s6 = int_to_ptr.vmem [resolvable:$false] %s1056_s6 }
 0x1b9   : > { %p1054_p13 = pnand %p1053_p9, %p1618_p11  ;;  %s1058_s8 = scalar_lea.vmem %s1057_s6, 32 }
 0x1ba   : > { %s1493_s29 = scalar_lea.hbm %s1617_s26, %s712_s18  ;;  %p1059_p2 = scmp.lt.s32.totalorder %s568_s5, %s1057_s6 }
 0x1bb   : > { %p1055_p0 = pneg %p1054_p13  ;;  %p1060_p5 = scmp.lt.s32.totalorder %s1058_s8, %s1052_s24 }
 0x1bd   : > { %p1061_p8 = por %p1060_p5, %p1059_p2 }
 0x1bf   : > { %p1062_p12 = pnand %p1061_p8, %p1055_p0 }
 0x1c1   : > { %1065 = shalt.err (!%p1062_p12)
}
 0x1c2   : > { %s1066_s3 = scalar_lea.hbm %s1493_s29, 16  ;;  %s1070_s15 = scalar_lea.hbm %s1617_s26, 32 }
 0x1c3   : > { %p1067_p1 = scmp.ne.s32.totalorder %s1493_s29, %s1066_s3  ;;  %p1071_p3 = scmp.lt.u32.totalorder %s1493_s29, %s1617_s26 }
 0x1c4   : > { %p1072_p4 = scmp.lt.u32.totalorder %s1070_s15, %s1066_s3  ;;  %p1074_p9 = scmp.lt.u32.totalorder %s1066_s3, %s1493_s29 }
 0x1c5   : > { %p1068_p6 = pnand %p1067_p1, %p1618_p11 }
 0x1c6   : > { %p1073_p7 = por %p1072_p4, %p1071_p3 }
 0x1c7   : > { %p1069_p10 = pneg %p1068_p6 }
 0x1c8   : > { %p1075_p13 = por %p1074_p9, %p1073_p7 }
 0x1ca   : > { %p1076_p0 = pnand %p1075_p13, %p1069_p10 }
 0x1cc   : > { %1079 = shalt.err (!%p1076_p0)
}
 0x1cd   : > { %874 = dma.vmem_to_hbm [thread:$0]  (%p1618_p11), %s568_s5, 16, %s1493_s29, %s551_s23  }
 0x1ce   : > { %s1619_s24 = sld [smem:[#allocation22_spill]]  ;;  %s580_s6 = sshll.u32 %s228_s11, 4  ;;  %s581_s6 = int_to_ptr.vmem [resolvable:$true] %s580_s6 }
 0x1cf   : > { %s555_s8 = scalar_lea.sflag [#allocation11], %s1445_s12  ;;  %s1080_s3 = scalar_lea.vmem %s581_s6, 16 }
 0x1d0   : > { %p1081_p2 = scmp.ne.s32.totalorder %s581_s6, %s1080_s3  ;;  %s1221_s4 = smov [#allocation10]  }
 0x1d1   : > { %s1084_s10 = sshll.u32 %s1221_s4, 4  ;;  %s1085_s10 = int_to_ptr.vmem [resolvable:$false] %s1084_s10 }
 0x1d2   : > { %p1082_p5 = pnand %p1081_p2, %p1618_p11  ;;  %s1086_s15 = scalar_lea.vmem %s1085_s10, 32 }
 0x1d3   : > { %p1087_p12 = scmp.lt.s32.totalorder %s581_s6, %s1085_s10  ;;  %p1088_p1 = scmp.lt.s32.totalorder %s1086_s15, %s1080_s3 }
 0x1d4   : > { %s1520_s9 = scalar_lea.hbm %s1619_s24, %s712_s18  ;;  %p1083_p8 = pneg %p1082_p5 }
 0x1d5   : > { %p1089_p6 = por %p1088_p1, %p1087_p12 }
 0x1d7   : > { %p1090_p10 = pnand %p1089_p6, %p1083_p8 }
 0x1d9   : > { %1093 = shalt.err (!%p1090_p10)
}
 0x1da   : > { %s1094_s19 = scalar_lea.hbm %s1520_s9, 16  ;;  %s1098_s18 = scalar_lea.hbm %s1619_s24, 32 }
 0x1db   : > { %p1095_p3 = scmp.ne.s32.totalorder %s1520_s9, %s1094_s19  ;;  %p1099_p9 = scmp.lt.u32.totalorder %s1520_s9, %s1619_s24 }
 0x1dc   : > { %p1100_p13 = scmp.lt.u32.totalorder %s1098_s18, %s1094_s19  ;;  %p1102_p2 = scmp.lt.u32.totalorder %s1094_s19, %s1520_s9 }
 0x1dd   : > { %p1096_p4 = pnand %p1095_p3, %p1618_p11 }
 0x1de   : > { %p1101_p0 = por %p1100_p13, %p1099_p9 }
 0x1df   : > { %p1097_p7 = pneg %p1096_p4 }
 0x1e0   : > { %p1103_p5 = por %p1102_p2, %p1101_p0 }
 0x1e2   : > { %p1104_p8 = pnand %p1103_p5, %p1097_p7 }
 0x1e4   : > { %1107 = shalt.err (!%p1104_p8)
}
 0x1e5   : > { %875 = dma.vmem_to_hbm [thread:$0]  (%p1618_p11), %s581_s6, 16, %s1520_s9, %s555_s8  }
 0x1e6 PF: > { %s1620_s23 = sld [smem:[#allocation16_spill]]  ;;  %s1621_s2 = sld [smem:[#allocation17_spill]] }
 0x1e7   : > { %p896_p12 = scmp.ge.s32.totalorder %s1210_s22, 2 }
 0x1ec   : > { %s592_s30 = sand.u32 1, %s1620_s23   ;;  %p1622_p1 = scmp.ne.s32.totalorder %s1621_s2, 0 }
 0x1ed   : > { %s593_s25 = scalar_lea.sflag [#allocation6], %s592_s30 }
 0x1ee   : > { %p887_p6 = pnand %p896_p12, %p1622_p1 }
 0x1f0   : > { %1161 = dma.done.wait (!%p887_p6), %s593_s25, 16  }
 0x1f1   : > { %1163 = vsyncadd (!%p887_p6), %s593_s25, 4294967280  ;;  %s601_s27 = scalar_lea.sflag [#allocation11], %s592_s30 }
 0x1f2   : > { %1165 = dma.done.wait (!%p887_p6), %s601_s27, 16  }
 0x1f3   : > { %1167 = vsyncadd (!%p887_p6), %s601_s27, 4294967280  ;;  %s24_s22 = sadd.s32 1, %s1210_s22   ;;  %s1623_s28 = sld [smem:[#allocation18_spill]] }
 0x1f4   : > { %p21_p10 = scmp.ge.s32.totalorder %s24_s22, 6   ;;  %s1624_s9 = sld [smem:[#allocation19_spill]] }
 0x1f5   : > { %s1625_s12 = smov %s1174_s13  ;;  %s1626_s13 = smov %s1178_s14 }
 0x1f6   : > { %s1627_s14 = smov %s1379_s7  ;;  %s1628_s15 = smov %s1186_s16 }
 0x1f7   : > { %s1629_s16 = smov %s1190_s17  ;;  %s1630_s17 = smov %s1382_s1 }
 0x1f8   : > { %s1631_s18 = smov %s1202_s20  ;;  %s1632_s19 = smov %s1206_s21 }
 0x1f9   : > { %s1633_s20 = smov %s1623_s28  ;;  %23 = sbr.rel (!%p21_p10) target bundleno = 16 (0x10), region = 102 }
 0x1fa   : > { %s1634_s21 = smov %s1624_s9 }
 0x200   :  { %605 = vsyncpa [#allocation5], 1 }
 0x201   :  { %607 = vsyncpa [#allocation5 + $0x1], 1 }
 0x202   :  { %608 = vsyncpa [#allocation8], 1 }
 0x203   :  { %609 = vsyncpa [#allocation6], 1 }
 0x204   :  { %611 = vsyncpa [#allocation6 + $0x1], 1 }
 0x205   :  { %612 = vsyncpa [#allocation11], 1 }
 0x206   :  { %614 = vsyncpa [#allocation11 + $0x1], 1 }

</bundles_post_ra>
